<compile_context>
chip_gen: v7x
topology: tpu7x:2x2x1
jax: 0.10.0
libtpu: 0.0.40
codegen_flags: <defaults>
</compile_context>

<pallas_src>
import functools

import jax
import jax.numpy as jnp
from jax.experimental import pallas as pl
from jax.experimental.pallas import tpu as pltpu


def _round_up(x, m):
    return ((x + m - 1) // m) * m


def _tpu_vmem_capacity_bytes():
    try:
        info = pltpu.get_tpu_info()
        cap = getattr(info, "vmem_capacity_bytes", None)
        if cap:
            return int(cap)
    except Exception:
        pass
    return 64 * 1024 * 1024  # conservative fallback (v7x per-TC VMEM)


def _infonce_kernel(scale_ref, f1_ref, f2_hbm, loss_ref,
                    f2n_ref, stage_ref, load_sem,
                    colmax_ref, colsum_ref, m_row_ref, l_row_ref,
                    acc_lse_ref, diag_sum_ref,
                    *, batch, tn, n_col_blocks):
    i = pl.program_id(0)
    n_tiles = pl.num_programs(0)

    eps_sq = jnp.float32(1e-24)      # (F.normalize eps = 1e-12) ** 2
    neg_big = jnp.float32(-1e30)     # finite "-inf" (avoids inf-inf NaNs)

    tm, d = f1_ref.shape
    bp = f2n_ref.shape[0]
    padded = bp > batch              # static: batch was zero-padded to bp rows

    # ---- one-time setup (single grid axis is a sequential loop on one TC):
    #      zero accumulators + output; normalize feat2 from HBM (pl.ANY space)
    #      into the resident VMEM scratch via chunked manual DMA.
    @pl.when(i == 0)
    def _init():
        colmax_ref[...] = jnp.full_like(colmax_ref, neg_big)
        colsum_ref[...] = jnp.zeros_like(colsum_ref)
        acc_lse_ref[...] = jnp.zeros_like(acc_lse_ref)
        diag_sum_ref[...] = jnp.zeros_like(diag_sum_ref)
        loss_ref[...] = jnp.zeros_like(loss_ref)

        n_chunks = bp // tm  # static

        def _load_chunk(c, carry):
            off = pl.multiple_of(c * tm, tm)
            cp = pltpu.make_async_copy(f2_hbm.at[pl.ds(off, tm)], stage_ref,
                                       load_sem)
            cp.start()
            cp.wait()
            f2 = stage_ref[...].astype(jnp.float32)
            inv2 = jax.lax.rsqrt(
                jnp.maximum(jnp.sum(f2 * f2, axis=-1, keepdims=True), eps_sq))
            f2n_ref[pl.ds(off, tm), :] = (f2 * inv2).astype(f2n_ref.dtype)
            return carry

        jax.lax.fori_loop(0, n_chunks, _load_chunk, 0)

    scale = scale_ref[0]

    # ---- normalize the current f1 row tile; fold logit_scale in here so the
    #      logits blocks need no extra elementwise scaling.
    f1 = f1_ref[...].astype(jnp.float32)                               # (TM, D)
    inv1 = jax.lax.rsqrt(
        jnp.maximum(jnp.sum(f1 * f1, axis=-1, keepdims=True), eps_sq))
    f1ns = f1 * (inv1 * scale)                                         # (TM, D) f32
    f1_mm = f1ns.astype(f2n_ref.dtype)                                 # MXU operand

    row0 = pl.multiple_of(i * tm, tm)

    # ---- positive (diagonal) logits from the normalized f2 scratch rows of
    #      this row tile (f32 accumulation; no eye mask, no extra HBM read).
    f2n_rows = f2n_ref[pl.ds(row0, tm), :].astype(jnp.float32)         # (TM, D)
    diag = jnp.sum(f1ns * f2n_rows, axis=-1, keepdims=True)            # (TM, 1)

    if padded:
        row_ids = row0 + jax.lax.broadcasted_iota(jnp.int32, (tm, 1), 0)
        row_valid = row_ids < batch                                    # (TM, 1)

    # ---- per-row-tile online state for the row-direction LSE.
    m_row_ref[...] = jnp.full_like(m_row_ref, neg_big)
    l_row_ref[...] = jnp.zeros_like(l_row_ref)

    def _col_step(c, carry=0):
        col0 = c * tn
        if not isinstance(col0, int):
            col0 = pl.multiple_of(col0, tn)
        f2n_blk = f2n_ref[pl.ds(col0, tn), :]                          # (TN, D)
        # similarity block on the MXU: contract on D (A @ B^T, no transposes)
        logits = jax.lax.dot_general(
            f1_mm, f2n_blk,
            dimension_numbers=(((1,), (1,)), ((), ())),
            preferred_element_type=jnp.float32)                        # (TM, TN)
        if padded:
            col_ids = col0 + jax.lax.broadcasted_iota(jnp.int32, (1, tn), 1)
            valid = jnp.logical_and(row_valid, col_ids < batch)
            logits = jnp.where(valid, logits, neg_big)

        # row direction (image1 -> image2): online LSE across column blocks.
        # (exp-sharing between the two directions is skipped: only safe for
        #  bounded logit_scale, see review.)
        m_old = m_row_ref[...]
        m_new = jnp.maximum(m_old, jnp.max(logits, axis=-1, keepdims=True))
        l_row_ref[...] = (l_row_ref[...] * jnp.exp(m_old - m_new)
                          + jnp.sum(jnp.exp(logits - m_new), axis=-1,
                                    keepdims=True))
        m_row_ref[...] = m_new

        # column direction (image2 -> image1): online LSE across row tiles
        # using axis=0 (sublane) reductions -- logits.T is never materialized.
        cm_old = colmax_ref[:, pl.ds(col0, tn)]
        cm_new = jnp.maximum(cm_old, jnp.max(logits, axis=0, keepdims=True))
        colsum_ref[:, pl.ds(col0, tn)] = (
            colsum_ref[:, pl.ds(col0, tn)] * jnp.exp(cm_old - cm_new)
            + jnp.sum(jnp.exp(logits - cm_new), axis=0, keepdims=True))
        colmax_ref[:, pl.ds(col0, tn)] = cm_new
        return carry

    if n_col_blocks == 1:
        _col_step(0)
    else:
        jax.lax.fori_loop(0, n_col_blocks, _col_step, 0)

    # ---- accumulate this row tile's contributions (masked for padded rows).
    lse_row = m_row_ref[...] + jnp.log(l_row_ref[...])                 # (TM, 1)
    if padded:
        lse_row = jnp.where(row_valid, lse_row, 0.0)
        diag = jnp.where(row_valid, diag, 0.0)
    acc_lse_ref[...] += jnp.sum(lse_row, keepdims=True)                # (1, 1)
    diag_sum_ref[...] += jnp.sum(diag, keepdims=True)                  # (1, 1)

    # ---- finalize on the last row tile.
    @pl.when(i == n_tiles - 1)
    def _finalize():
        lse_col = colmax_ref[...] + jnp.log(colsum_ref[...])           # (1, Bp)
        if padded:
            cids = jax.lax.broadcasted_iota(jnp.int32, (1, bp), 1)
            lse_col = jnp.where(cids < batch, lse_col, 0.0)
        total = (acc_lse_ref[...] + jnp.sum(lse_col, keepdims=True)
                 - 2.0 * diag_sum_ref[...])                            # (1, 1)
        loss_ref[...] = total * jnp.float32(0.5 / batch)


def infonce_loss(feat1, feat2, logit_scale=1.0, block_rows=None,
                 col_block=2048, use_bf16_matmul=True):
    """InfoNCE loss matching the PyTorch module's forward().

    use_bf16_matmul=True runs the similarity matmul in bf16 on the MXU
    (~1e-3-level relative loss drift); set it to False for the exact f32
    path (e.g. for very large CLIP-style logit scales).
    """
    assert feat1.ndim == 2 and feat1.shape == feat2.shape
    b, d = feat1.shape

    vmem_cap = _tpu_vmem_capacity_bytes()

    # Row-tile size: 512 where VMEM allows (v5e/v6e: 128 MiB), 256 on smaller-
    # VMEM parts (v7x: 64 MiB); shrinks to one 8-aligned tile for tiny batches.
    if block_rows is None:
        block_rows = 512 if vmem_cap >= 100 * 1024 * 1024 else 256
    tm = min(_round_up(block_rows, 8), _round_up(b, 8))
    bp = _round_up(b, tm)

    # Column tiling: bounds the (tm, tn) logits working set independent of B.
    if bp <= col_block:
        tn = bp                                  # single column block
    else:
        tn = tm * max(1, col_block // tm)        # multiple of tm
        if tn % 128 == 0:
            bp = _round_up(b, tn)                # stays tm-aligned (tn % tm == 0)
        else:
            tn = bp                              # lane-unfriendly -> single block
    n_col_blocks = bp // tn
    n_tiles = bp // tm

    if bp != b:  # pad the batch with zero rows; masked out inside the kernel
        pad = bp - b
        feat1 = jnp.pad(feat1, ((0, pad), (0, 0)))
        feat2 = jnp.pad(feat2, ((0, pad), (0, 0)))

    mm_dtype = jnp.bfloat16 if use_bf16_matmul else jnp.float32
    scale = jnp.asarray([logit_scale], dtype=jnp.float32)

    grid_spec = pltpu.PrefetchScalarGridSpec(
        num_scalar_prefetch=0,
        grid=(n_tiles,),
        in_specs=[
            pl.BlockSpec(memory_space=pltpu.MemorySpace.SMEM),  # logit_scale
            pl.BlockSpec((tm, d), lambda i: (i, 0)),            # f1 row tile
            pl.BlockSpec(memory_space=pl.ANY),                  # f2 stays in HBM
        ],
        out_specs=pl.BlockSpec((1, 1), lambda i: (0, 0)),
        scratch_shapes=[
            pltpu.VMEM((bp, d), mm_dtype),       # normalized f2 (written once)
            pltpu.VMEM((tm, d), feat2.dtype),    # staging for the one-time load
            pltpu.SemaphoreType.DMA(()),         # DMA completion semaphore
            pltpu.VMEM((1, bp), jnp.float32),    # running column max
            pltpu.VMEM((1, bp), jnp.float32),    # running column sum-exp
            pltpu.VMEM((tm, 1), jnp.float32),    # per-tile running row max
            pltpu.VMEM((tm, 1), jnp.float32),    # per-tile running row sum-exp
            pltpu.VMEM((1, 1), jnp.float32),     # sum of row-direction LSE
            pltpu.VMEM((1, 1), jnp.float32),     # sum of diagonal logits
        ],
    )

    # Note: a v7x dual-TensorCore split (parallel leading grid axis with
    # per-core partial LSE state + tiny merge) is intentionally not done here;
    # the single reduction axis keeps the kernel on one TensorCore.
    out = pl.pallas_call(
        functools.partial(_infonce_kernel, batch=b, tn=tn,
                          n_col_blocks=n_col_blocks),
        out_shape=jax.ShapeDtypeStruct((1, 1), jnp.float32),
        grid_spec=grid_spec,
        compiler_params=pltpu.CompilerParams(
            dimension_semantics=("arbitrary",),              # reduction axis
            vmem_limit_bytes=int(vmem_cap - vmem_cap // 4),  # ~75% of physical
        ),
    )(scale, feat1, feat2)
    return out[0, 0]


def _reference_loss(feat1, feat2, logit_scale=1.0):
    f1 = feat1.astype(jnp.float32)
    f2 = feat2.astype(jnp.float32)
    f1 = f1 / jnp.maximum(jnp.sqrt(jnp.sum(f1 * f1, -1, keepdims=True)), 1e-12)
    f2 = f2 / jnp.maximum(jnp.sqrt(jnp.sum(f2 * f2, -1, keepdims=True)), 1e-12)
    logits = logit_scale * (f1 @ f2.T)

    def ce(lg):
        lse = jax.scipy.special.logsumexp(lg, axis=-1)
        return jnp.mean(lse - jnp.diagonal(lg))

    return 0.5 * (ce(logits) + ce(logits.T))


if __name__ == "__main__":
    key = jax.random.PRNGKey(0)
    k1, k2, k3, k4 = jax.random.split(key, 4)

    # Small demo shapes (batch=8, hidden=32), matching the module's 2-D inputs.
    B, D = 8, 32
    feat1 = jax.random.normal(k1, (B, D), dtype=jnp.float32)
    feat2 = jax.random.normal(k2, (B, D), dtype=jnp.float32)
    ref = _reference_loss(feat1, feat2, 1.0)

    # Exact f32-matmul path: tight tolerance vs. the pure-JAX reference.
    loss_f32 = infonce_loss(feat1, feat2, logit_scale=1.0,
                            use_bf16_matmul=False)
    jax.block_until_ready(loss_f32)
    assert jnp.allclose(loss_f32, ref, rtol=1e-4, atol=1e-4), (loss_f32, ref)

    # Default fast path (bf16 MXU matmul): looser tolerance.
    loss_bf16 = infonce_loss(feat1, feat2, logit_scale=1.0)
    jax.block_until_ready(loss_bf16)
    assert jnp.allclose(loss_bf16, ref, rtol=2e-2, atol=2e-2), (loss_bf16, ref)

    # Multi row-tile grid + padded-batch path.
    B2, D2 = 12, 32
    f1b = jax.random.normal(k3, (B2, D2), dtype=jnp.float32)
    f2b = jax.random.normal(k4, (B2, D2), dtype=jnp.float32)
    ref2 = _reference_loss(f1b, f2b, 2.5)
    loss2 = infonce_loss(f1b, f2b, logit_scale=2.5, block_rows=8,
                         use_bf16_matmul=False)
    jax.block_until_ready(loss2)
    assert jnp.allclose(loss2, ref2, rtol=1e-4, atol=1e-4), (loss2, ref2)

    # Multi column-block path (inner online-LSE loop) + padding + multi-tile.
    B3, D3 = 160, 64
    f1c = jax.random.normal(k3, (B3, D3), dtype=jnp.float32)
    f2c = jax.random.normal(k4, (B3, D3), dtype=jnp.float32)
    ref3 = _reference_loss(f1c, f2c, 2.0)
    loss3 = infonce_loss(f1c, f2c, logit_scale=2.0, block_rows=128,
                         col_block=128, use_bf16_matmul=False)
    jax.block_until_ready(loss3)
    assert jnp.allclose(loss3, ref3, rtol=1e-4, atol=1e-4), (loss3, ref3)

    print("KERNEL_OK")
</pallas_src>

<mosaic_0001>
module attributes {stable_mosaic.version = 11 : i64} {
  func.func @_infonce_kernel(%arg0: i32, %arg1: memref<1xf32, #tpu.memory_space<smem>>, %arg2: memref<8x32xf32, #tpu.memory_space<vmem>>, %arg3: memref<8x32xf32, #tpu.memory_space<any>>, %arg4: memref<1x1xf32, #tpu.memory_space<vmem>>, %arg5: memref<8x32xf32, #tpu.memory_space<vmem>>, %arg6: memref<8x32xf32, #tpu.memory_space<vmem>>, %arg7: memref<!tpu.dma_semaphore, #tpu.memory_space<semaphore_mem>>, %arg8: memref<1x8xf32, #tpu.memory_space<vmem>>, %arg9: memref<1x8xf32, #tpu.memory_space<vmem>>, %arg10: memref<8x1xf32, #tpu.memory_space<vmem>>, %arg11: memref<8x1xf32, #tpu.memory_space<vmem>>, %arg12: memref<1x1xf32, #tpu.memory_space<vmem>>, %arg13: memref<1x1xf32, #tpu.memory_space<vmem>>) attributes {dimension_semantics = [#tpu.dimension_semantics<arbitrary>], iteration_bounds = array<i64: 1>, scalar_prefetch = 0 : i64, scratch_operands = 9 : i64, tpu.core_type = #tpu.core_type<tc>, window_params = [{transform_indices = @transform_0, window_bounds = array<i64: 1>}, {transform_indices = @transform_1, window_bounds = array<i64: 8, 32>}, {}, {pipeline_mode = #tpu.pipeline_mode<synchronous>, transform_indices = @transform_3, window_bounds = array<i64: 1, 1>}]} {
    %c0_i32 = arith.constant 0 : i32
    %0 = arith.cmpi eq, %arg0, %c0_i32 : i32
    %1 = arith.extui %0 : i1 to i32
    %cst = arith.constant -1.000000e+30 : f32
    %cst_0 = arith.constant 1.000000e-24 : f32
    %c0_i32_1 = arith.constant 0 : i32
    %2 = arith.cmpi ne, %1, %c0_i32_1 : i32
    scf.if %2 {
      %83 = vector.broadcast %cst : f32 to vector<1x8xf32>
      %c0_53 = arith.constant 0 : index
      %c0_54 = arith.constant 0 : index
      %84 = vector.load %arg8[%c0_53, %c0_54] : memref<1x8xf32, #tpu.memory_space<vmem>>, vector<1x8xf32>
      tpu.vector_store %arg8[%c0_53, %c0_54], %83 {strides = array<i32>} : memref<1x8xf32, #tpu.memory_space<vmem>>, vector<1x8xf32>,
      %cst_55 = arith.constant 0.000000e+00 : f32
      %85 = vector.broadcast %cst_55 : f32 to vector<1x8xf32>
      %c0_56 = arith.constant 0 : index
      %c0_57 = arith.constant 0 : index
      %86 = vector.load %arg9[%c0_56, %c0_57] : memref<1x8xf32, #tpu.memory_space<vmem>>, vector<1x8xf32>
      tpu.vector_store %arg9[%c0_56, %c0_57], %85 {strides = array<i32>} : memref<1x8xf32, #tpu.memory_space<vmem>>, vector<1x8xf32>,
      %cst_58 = arith.constant 0.000000e+00 : f32
      %87 = vector.broadcast %cst_58 : f32 to vector<1x1xf32>
      %c0_59 = arith.constant 0 : index
      %c0_60 = arith.constant 0 : index
      %88 = vector.load %arg12[%c0_59, %c0_60] : memref<1x1xf32, #tpu.memory_space<vmem>>, vector<1x1xf32>
      tpu.vector_store %arg12[%c0_59, %c0_60], %87 {strides = array<i32>} : memref<1x1xf32, #tpu.memory_space<vmem>>, vector<1x1xf32>,
      %cst_61 = arith.constant 0.000000e+00 : f32
      %89 = vector.broadcast %cst_61 : f32 to vector<1x1xf32>
      %c0_62 = arith.constant 0 : index
      %c0_63 = arith.constant 0 : index
      %90 = vector.load %arg13[%c0_62, %c0_63] : memref<1x1xf32, #tpu.memory_space<vmem>>, vector<1x1xf32>
      tpu.vector_store %arg13[%c0_62, %c0_63], %89 {strides = array<i32>} : memref<1x1xf32, #tpu.memory_space<vmem>>, vector<1x1xf32>,
      %cst_64 = arith.constant 0.000000e+00 : f32
      %91 = vector.broadcast %cst_64 : f32 to vector<1x1xf32>
      %c0_65 = arith.constant 0 : index
      %c0_66 = arith.constant 0 : index
      %92 = vector.load %arg4[%c0_65, %c0_66] : memref<1x1xf32, #tpu.memory_space<vmem>>, vector<1x1xf32>
      tpu.vector_store %arg4[%c0_65, %c0_66], %91 {strides = array<i32>} : memref<1x1xf32, #tpu.memory_space<vmem>>, vector<1x1xf32>,
      %c0_i32_67 = arith.constant 0 : i32
      %c8_i32_68 = arith.constant 8 : i32
      %93 = arith.muli %c0_i32_67, %c8_i32_68 : i32
      %94 = tpu.assume_multiple %93, 8 : i32
      %c0_i32_69 = arith.constant 0 : i32
      %95 = tpu.memref_slice %arg3[%94, %c0_i32_69] : memref<8x32xf32, #tpu.memory_space<any>> -> memref<8x32xf32, #tpu.memory_space<any>>
      tpu.enqueue_dma source(%95 : memref<8x32xf32, #tpu.memory_space<any>>) target(%arg6 : memref<8x32xf32, #tpu.memory_space<vmem>>) target_semaphore(%arg7 : memref<!tpu.dma_semaphore, #tpu.memory_space<semaphore_mem>>)
      %c0_i32_70 = arith.constant 0 : i32
      %96 = tpu.memref_slice %arg3[%94, %c0_i32_70] : memref<8x32xf32, #tpu.memory_space<any>> -> memref<8x32xf32, #tpu.memory_space<any>>
      tpu.wait_dma2 semaphore(%arg7 : memref<!tpu.dma_semaphore, #tpu.memory_space<semaphore_mem>>) src(%96 : memref<8x32xf32, #tpu.memory_space<any>>) dst(%arg6 : memref<8x32xf32, #tpu.memory_space<vmem>>)
      %c0_71 = arith.constant 0 : index
      %c0_72 = arith.constant 0 : index
      %97 = vector.load %arg6[%c0_71, %c0_72] : memref<8x32xf32, #tpu.memory_space<vmem>>, vector<8x32xf32>
      %98 = arith.mulf %97, %97 : vector<8x32xf32>
      %cst_73 = arith.constant dense<0.000000e+00> : vector<8xf32>
      %99 = vector.multi_reduction <add>, %98, %cst_73 [1] : vector<8x32xf32> to vector<8xf32>
      %100 = vector.shape_cast %99 : vector<8xf32> to vector<8x1xf32>
      %101 = vector.broadcast %cst_0 : f32 to vector<8x1xf32>
      %102 = arith.maximumf %100, %101 : vector<8x1xf32>
      %103 = math.rsqrt %102 : vector<8x1xf32>
      %104 = vector.broadcast %103 : vector<8x1xf32> to vector<8x32xf32>
      %105 = arith.mulf %97, %104 : vector<8x32xf32>
      %106 = arith.index_cast %94 : i32 to index
      %c0_74 = arith.constant 0 : index
      %107 = vector.load %arg5[%106, %c0_74] : memref<8x32xf32, #tpu.memory_space<vmem>>, vector<8x32xf32>
      tpu.vector_store %arg5[%106, %c0_74], %105 {strides = array<i32>} : memref<8x32xf32, #tpu.memory_space<vmem>>, vector<8x32xf32>,
      %c1_i32 = arith.constant 1 : i32
    } else {
    }
    %c0 = arith.constant 0 : index
    %3 = memref.load %arg1[%c0] : memref<1xf32, #tpu.memory_space<smem>>
    %c0_2 = arith.constant 0 : index
    %c0_3 = arith.constant 0 : index
    %4 = vector.load %arg2[%c0_2, %c0_3] : memref<8x32xf32, #tpu.memory_space<vmem>>, vector<8x32xf32>
    %5 = arith.mulf %4, %4 : vector<8x32xf32>
    %cst_4 = arith.constant dense<0.000000e+00> : vector<8xf32>
    %6 = vector.multi_reduction <add>, %5, %cst_4 [1] : vector<8x32xf32> to vector<8xf32>
    %7 = vector.shape_cast %6 : vector<8xf32> to vector<8x1xf32>
    %cst_5 = arith.constant 1.000000e-24 : f32
    %8 = vector.broadcast %cst_5 : f32 to vector<8x1xf32>
    %9 = arith.maximumf %7, %8 : vector<8x1xf32>
    %10 = math.rsqrt %9 : vector<8x1xf32>
    %11 = vector.broadcast %3 : f32 to vector<8x1xf32>
    %12 = arith.mulf %10, %11 : vector<8x1xf32>
    %13 = vector.broadcast %12 : vector<8x1xf32> to vector<8x32xf32>
    %14 = arith.mulf %4, %13 : vector<8x32xf32>
    %c8_i32 = arith.constant 8 : i32
    %15 = arith.muli %arg0, %c8_i32 : i32
    %16 = tpu.assume_multiple %15, 8 : i32
    %17 = arith.index_cast %16 : i32 to index
    %c0_6 = arith.constant 0 : index
    %18 = vector.load %arg5[%17, %c0_6] : memref<8x32xf32, #tpu.memory_space<vmem>>, vector<8x32xf32>
    %19 = arith.mulf %14, %18 : vector<8x32xf32>
    %cst_7 = arith.constant dense<0.000000e+00> : vector<8xf32>
    %20 = vector.multi_reduction <add>, %19, %cst_7 [1] : vector<8x32xf32> to vector<8xf32>
    %21 = vector.shape_cast %20 : vector<8xf32> to vector<8x1xf32>
    %cst_8 = arith.constant -1.000000e+30 : f32
    %22 = vector.broadcast %cst_8 : f32 to vector<8x1xf32>
    %c0_9 = arith.constant 0 : index
    %c0_10 = arith.constant 0 : index
    %23 = vector.load %arg10[%c0_9, %c0_10] : memref<8x1xf32, #tpu.memory_space<vmem>>, vector<8x1xf32>
    tpu.vector_store %arg10[%c0_9, %c0_10], %22 {strides = array<i32>} : memref<8x1xf32, #tpu.memory_space<vmem>>, vector<8x1xf32>,
    %cst_11 = arith.constant 0.000000e+00 : f32
    %24 = vector.broadcast %cst_11 : f32 to vector<8x1xf32>
    %c0_12 = arith.constant 0 : index
    %c0_13 = arith.constant 0 : index
    %25 = vector.load %arg11[%c0_12, %c0_13] : memref<8x1xf32, #tpu.memory_space<vmem>>, vector<8x1xf32>
    tpu.vector_store %arg11[%c0_12, %c0_13], %24 {strides = array<i32>} : memref<8x1xf32, #tpu.memory_space<vmem>>, vector<8x1xf32>,
    %c0_14 = arith.constant 0 : index
    %c0_15 = arith.constant 0 : index
    %26 = vector.load %arg5[%c0_14, %c0_15] : memref<8x32xf32, #tpu.memory_space<vmem>>, vector<8x32xf32>
    %cst_16 = arith.constant dense<0.000000e+00> : vector<8x8xf32>
    %27 = tpu.matmul %14, %26, %cst_16 {dimension_numbers = #tpu.dot_dimension_numbers<[1], [1], [0], [0], [0, 0, 1, 0], [], []>} : vector<8x32xf32>, vector<8x32xf32>, vector<8x8xf32> -> vector<8x8xf32>
    %c0_17 = arith.constant 0 : index
    %c0_18 = arith.constant 0 : index
    %28 = vector.load %arg10[%c0_17, %c0_18] : memref<8x1xf32, #tpu.memory_space<vmem>>, vector<8x1xf32>
    %cst_19 = arith.constant dense<0xFF800000> : vector<8xf32>
    %29 = vector.multi_reduction <maximumf>, %27, %cst_19 [1] : vector<8x8xf32> to vector<8xf32>
    %30 = vector.shape_cast %29 : vector<8xf32> to vector<8x1xf32>
    %31 = arith.maximumf %28, %30 : vector<8x1xf32>
    %c0_20 = arith.constant 0 : index
    %c0_21 = arith.constant 0 : index
    %32 = vector.load %arg11[%c0_20, %c0_21] : memref<8x1xf32, #tpu.memory_space<vmem>>, vector<8x1xf32>
    %33 = arith.subf %28, %31 : vector<8x1xf32>
    %34 = math.exp %33 : vector<8x1xf32>
    %35 = arith.mulf %32, %34 : vector<8x1xf32>
    %36 = vector.broadcast %31 : vector<8x1xf32> to vector<8x8xf32>
    %37 = arith.subf %27, %36 : vector<8x8xf32>
    %38 = math.exp %37 : vector<8x8xf32>
    %cst_22 = arith.constant dense<0.000000e+00> : vector<8xf32>
    %39 = vector.multi_reduction <add>, %38, %cst_22 [1] : vector<8x8xf32> to vector<8xf32>
    %40 = vector.shape_cast %39 : vector<8xf32> to vector<8x1xf32>
    %41 = arith.addf %35, %40 : vector<8x1xf32>
    %c0_23 = arith.constant 0 : index
    %c0_24 = arith.constant 0 : index
    %42 = vector.load %arg11[%c0_23, %c0_24] : memref<8x1xf32, #tpu.memory_space<vmem>>, vector<8x1xf32>
    tpu.vector_store %arg11[%c0_23, %c0_24], %41 {strides = array<i32>} : memref<8x1xf32, #tpu.memory_space<vmem>>, vector<8x1xf32>,
    %c0_25 = arith.constant 0 : index
    %c0_26 = arith.constant 0 : index
    %43 = vector.load %arg10[%c0_25, %c0_26] : memref<8x1xf32, #tpu.memory_space<vmem>>, vector<8x1xf32>
    tpu.vector_store %arg10[%c0_25, %c0_26], %31 {strides = array<i32>} : memref<8x1xf32, #tpu.memory_space<vmem>>, vector<8x1xf32>,
    %c0_27 = arith.constant 0 : index
    %c0_28 = arith.constant 0 : index
    %44 = vector.load %arg8[%c0_27, %c0_28] : memref<1x8xf32, #tpu.memory_space<vmem>>, vector<1x8xf32>
    %cst_29 = arith.constant dense<0xFF800000> : vector<8xf32>
    %45 = vector.multi_reduction <maximumf>, %27, %cst_29 [0] : vector<8x8xf32> to vector<8xf32>
    %46 = vector.shape_cast %45 : vector<8xf32> to vector<1x8xf32>
    %47 = arith.maximumf %44, %46 : vector<1x8xf32>
    %c0_30 = arith.constant 0 : index
    %c0_31 = arith.constant 0 : index
    %48 = vector.load %arg9[%c0_30, %c0_31] : memref<1x8xf32, #tpu.memory_space<vmem>>, vector<1x8xf32>
    %49 = arith.subf %44, %47 : vector<1x8xf32>
    %50 = math.exp %49 : vector<1x8xf32>
    %51 = arith.mulf %48, %50 : vector<1x8xf32>
    %52 = vector.broadcast %47 : vector<1x8xf32> to vector<8x8xf32>
    %53 = arith.subf %27, %52 : vector<8x8xf32>
    %54 = math.exp %53 : vector<8x8xf32>
    %cst_32 = arith.constant dense<0.000000e+00> : vector<8xf32>
    %55 = vector.multi_reduction <add>, %54, %cst_32 [0] : vector<8x8xf32> to vector<8xf32>
    %56 = vector.shape_cast %55 : vector<8xf32> to vector<1x8xf32>
    %57 = arith.addf %51, %56 : vector<1x8xf32>
    %c0_33 = arith.constant 0 : index
    %c0_34 = arith.constant 0 : index
    %58 = vector.load %arg9[%c0_33, %c0_34] : memref<1x8xf32, #tpu.memory_space<vmem>>, vector<1x8xf32>
    tpu.vector_store %arg9[%c0_33, %c0_34], %57 {strides = array<i32>} : memref<1x8xf32, #tpu.memory_space<vmem>>, vector<1x8xf32>,
    %c0_35 = arith.constant 0 : index
    %c0_36 = arith.constant 0 : index
    %59 = vector.load %arg8[%c0_35, %c0_36] : memref<1x8xf32, #tpu.memory_space<vmem>>, vector<1x8xf32>
    tpu.vector_store %arg8[%c0_35, %c0_36], %47 {strides = array<i32>} : memref<1x8xf32, #tpu.memory_space<vmem>>, vector<1x8xf32>,
    %c0_37 = arith.constant 0 : index
    %c0_38 = arith.constant 0 : index
    %60 = vector.load %arg10[%c0_37, %c0_38] : memref<8x1xf32, #tpu.memory_space<vmem>>, vector<8x1xf32>
    %c0_39 = arith.constant 0 : index
    %c0_40 = arith.constant 0 : index
    %61 = vector.load %arg11[%c0_39, %c0_40] : memref<8x1xf32, #tpu.memory_space<vmem>>, vector<8x1xf32>
    %62 = math.log %61 : vector<8x1xf32>
    %63 = arith.addf %60, %62 : vector<8x1xf32>
    %c0_41 = arith.constant 0 : index
    %c0_42 = arith.constant 0 : index
    %64 = vector.load %arg12[%c0_41, %c0_42] : memref<1x1xf32, #tpu.memory_space<vmem>>, vector<1x1xf32>
    %65 = vector.shape_cast %63 : vector<8x1xf32> to vector<1x8x1xf32>
    %cst_43 = arith.constant dense<0.000000e+00> : vector<1xf32>
    %66 = vector.multi_reduction <add>, %65, %cst_43 [1, 2] : vector<1x8x1xf32> to vector<1xf32>
    %67 = vector.shape_cast %66 : vector<1xf32> to vector<1x1x1xf32>
    %68 = vector.extract %67[0, 0, 0] : f32 from vector<1x1x1xf32>
    %69 = vector.broadcast %68 : f32 to vector<1x1xf32>
    %70 = arith.addf %64, %69 : vector<1x1xf32>
    %c0_44 = arith.constant 0 : index
    %c0_45 = arith.constant 0 : index
    %71 = vector.load %arg12[%c0_44, %c0_45] : memref<1x1xf32, #tpu.memory_space<vmem>>, vector<1x1xf32>
    tpu.vector_store %arg12[%c0_44, %c0_45], %70 {strides = array<i32>} : memref<1x1xf32, #tpu.memory_space<vmem>>, vector<1x1xf32>,
    %c0_46 = arith.constant 0 : index
    %c0_47 = arith.constant 0 : index
    %72 = vector.load %arg13[%c0_46, %c0_47] : memref<1x1xf32, #tpu.memory_space<vmem>>, vector<1x1xf32>
    %73 = vector.shape_cast %21 : vector<8x1xf32> to vector<1x8x1xf32>
    %cst_48 = arith.constant dense<0.000000e+00> : vector<1xf32>
    %74 = vector.multi_reduction <add>, %73, %cst_48 [1, 2] : vector<1x8x1xf32> to vector<1xf32>
    %75 = vector.shape_cast %74 : vector<1xf32> to vector<1x1x1xf32>
    %76 = vector.extract %75[0, 0, 0] : f32 from vector<1x1x1xf32>
    %77 = vector.broadcast %76 : f32 to vector<1x1xf32>
    %78 = arith.addf %72, %77 : vector<1x1xf32>
    %c0_49 = arith.constant 0 : index
    %c0_50 = arith.constant 0 : index
    %79 = vector.load %arg13[%c0_49, %c0_50] : memref<1x1xf32, #tpu.memory_space<vmem>>, vector<1x1xf32>
    tpu.vector_store %arg13[%c0_49, %c0_50], %78 {strides = array<i32>} : memref<1x1xf32, #tpu.memory_space<vmem>>, vector<1x1xf32>,
    %c0_i32_51 = arith.constant 0 : i32
    %80 = arith.cmpi eq, %arg0, %c0_i32_51 : i32
    %81 = arith.extui %80 : i1 to i32
    %c0_i32_52 = arith.constant 0 : i32
    %82 = arith.cmpi ne, %81, %c0_i32_52 : i32
    scf.if %82 {
      %c0_53 = arith.constant 0 : index
      %c0_54 = arith.constant 0 : index
      %83 = vector.load %arg8[%c0_53, %c0_54] : memref<1x8xf32, #tpu.memory_space<vmem>>, vector<1x8xf32>
      %c0_55 = arith.constant 0 : index
      %c0_56 = arith.constant 0 : index
      %84 = vector.load %arg9[%c0_55, %c0_56] : memref<1x8xf32, #tpu.memory_space<vmem>>, vector<1x8xf32>
      %85 = math.log %84 : vector<1x8xf32>
      %86 = arith.addf %83, %85 : vector<1x8xf32>
      %c0_57 = arith.constant 0 : index
      %c0_58 = arith.constant 0 : index
      %87 = vector.load %arg12[%c0_57, %c0_58] : memref<1x1xf32, #tpu.memory_space<vmem>>, vector<1x1xf32>
      %88 = vector.shape_cast %86 : vector<1x8xf32> to vector<1x1x8xf32>
      %cst_59 = arith.constant dense<0.000000e+00> : vector<1xf32>
      %89 = vector.multi_reduction <add>, %88, %cst_59 [1, 2] : vector<1x1x8xf32> to vector<1xf32>
      %90 = vector.shape_cast %89 : vector<1xf32> to vector<1x1x1xf32>
      %91 = vector.extract %90[0, 0, 0] : f32 from vector<1x1x1xf32>
      %92 = vector.broadcast %91 : f32 to vector<1x1xf32>
      %93 = arith.addf %87, %92 : vector<1x1xf32>
      %c0_60 = arith.constant 0 : index
      %c0_61 = arith.constant 0 : index
      %94 = vector.load %arg13[%c0_60, %c0_61] : memref<1x1xf32, #tpu.memory_space<vmem>>, vector<1x1xf32>
      %cst_62 = arith.constant 2.000000e+00 : f32
      %95 = vector.broadcast %cst_62 : f32 to vector<1x1xf32>
      %96 = arith.mulf %95, %94 : vector<1x1xf32>
      %97 = arith.subf %93, %96 : vector<1x1xf32>
      %cst_63 = arith.constant 6.250000e-02 : f32
      %98 = vector.broadcast %cst_63 : f32 to vector<1x1xf32>
      %99 = arith.mulf %97, %98 : vector<1x1xf32>
      %c0_64 = arith.constant 0 : index
      %c0_65 = arith.constant 0 : index
      %100 = vector.load %arg4[%c0_64, %c0_65] : memref<1x1xf32, #tpu.memory_space<vmem>>, vector<1x1xf32>
      tpu.vector_store %arg4[%c0_64, %c0_65], %99 {strides = array<i32>} : memref<1x1xf32, #tpu.memory_space<vmem>>, vector<1x1xf32>,
    } else {
    }
    return
  }
  func.func @transform_0(%arg0: i32) -> i32 {
    %c0_i32 = arith.constant 0 : i32
    %c0_i32_0 = arith.constant 0 : i32
    return %c0_i32 : i32
  }
  func.func @transform_1(%arg0: i32) -> (i32, i32) {
    %c0_i32 = arith.constant 0 : i32
    %c0_i32_0 = arith.constant 0 : i32
    return %arg0, %c0_i32 : i32, i32
  }
  func.func @transform_3(%arg0: i32) -> (i32, i32) {
    %c0_i32 = arith.constant 0 : i32
    %c0_i32_0 = arith.constant 0 : i32
    %c0_i32_1 = arith.constant 0 : i32
    return %c0_i32, %c0_i32_0 : i32, i32
  }
}

</mosaic_0001>

<bundles_post_ra>
// kernel: tpu_custom_call.1
= control target key start
LH: loop header
LB: loop body
LE: loop exit
PB: predicated region body
PF: predicated region fallthrough
CT: control target
= control target key end

     0   :  { %9 = vsyncpa [#allocation13], 0  ;;  %s507_s0 = inlined_call_operand.<no memory space> [shape: f32[1], index: 0, kind: input, shape index: {}]   ;;  %s508_s1 = inlined_call_operand.hbm [shape: f32[8,32], index: 1, kind: input, shape index: {}]   ;;  %s509_s2 = inlined_call_operand.hbm [shape: f32[8,32], index: 2, kind: input, shape index: {}]   ;;  %s510_s3 = inlined_call_operand.hbm [shape: f32[1,1], index: 3, kind: output, shape index: {}]  }
   0x1   :  { %10 = vsyncpa [#allocation14], 0  ;;  %s412_s12 = smov [#allocation12]   ;;  %s340_s16 = scalar_lea.hbm %s508_s1, 128 }
   0x2   :  { %s19_s13 = sshll.u32 %s412_s12, 4  ;;  %p341_p0 = scmp.ne.s32.totalorder %s508_s1, %s340_s16  ;;  %s20_s13 = int_to_ptr.vmem [resolvable:$true] %s19_s13 }
   0x3   :  { %p344_p1 = scmp.lt.u32.totalorder %s340_s16, %s508_s1 }
   0x5   :  { %p346_p2 = pnand %p344_p1, %p341_p0 }
   0x7   :  { %349 = shalt.err (!%p346_p2)
}
   0x8   :  { %s350_s21 = scalar_lea.vmem %s20_s13, 128  ;;  %p355_p4 = scmp.lt.s32.totalorder %s20_s13, %s20_s13 }
   0x9   :  { %p351_p3 = scmp.ne.s32.totalorder %s20_s13, %s350_s21  ;;  %p356_p5 = scmp.lt.s32.totalorder %s350_s21, %s350_s21 }
   0xb   :  { %p357_p6 = por %p356_p5, %p355_p4 }
   0xd   :  { %p358_p7 = pnand %p357_p6, %p351_p3 }
   0xf   :  { %361 = shalt.err (!%p358_p7)
}
  0x10   :  { %22 = dma.hbm_to_vmem [thread:$0]  %s508_s1, 128, %s20_s13, [#allocation13]  }
  0x11   :  { %406 = dma.done.wait [#allocation13], 128  }
  0x12   :  { %407 = vsyncadd [#allocation13], 4294967168  ;;  %vm30_vm0 = vcmask 57344   ;;  %v413_v0 = vmov -1e+30   ;;  %v414_v1 = vmov 0.0  }
  0x13   :  { %31 = vst.msk [vmem:[#allocation5] sm:$0x1] %vm30_vm0, %v413_v0  ;;  %32 = vst.msk [vmem:[#allocation6] sm:$0x1] %vm30_vm0, %v414_v1  ;;  %vm33_vm1 = vcmask 0   ;;  %s415_s24 = smov [#allocation3]  }
  0x14   :  { %34 = vst.msk [vmem:[#allocation9] sm:$0x1] %vm33_vm1, %v414_v1  ;;  %35 = vst.msk [vmem:[#allocation10] sm:$0x1] %vm33_vm1, %v414_v1  ;;  %s44_s25 = sshll.u32 %s415_s24, 4  ;;  %s362_s27 = scalar_lea.hbm %s509_s2, 128  ;;  %s45_s25 = int_to_ptr.vmem [resolvable:$true] %s44_s25 }
  0x15   :  { %36 = vst.msk [vmem:[#allocation15] sm:$0x1] %vm33_vm1, %v414_v1  ;;  %p363_p8 = scmp.ne.s32.totalorder %s509_s2, %s362_s27  ;;  %p366_p9 = scmp.lt.u32.totalorder %s362_s27, %s509_s2 }
  0x17   :  { %p368_p10 = pnand %p366_p9, %p363_p8 }
  0x19   :  { %371 = shalt.err (!%p368_p10)  }
  0x1a   :  { %s372_s5 = scalar_lea.vmem %s45_s25, 128  ;;  %p377_p12 = scmp.lt.s32.totalorder %s45_s25, %s45_s25 }
  0x1b   :  { %p373_p11 = scmp.ne.s32.totalorder %s45_s25, %s372_s5  ;;  %p378_p13 = scmp.lt.s32.totalorder %s372_s5, %s372_s5 }
  0x1d   :  { %p379_p0 = por %p378_p13, %p377_p12 }
  0x1f   :  { %p380_p1 = pnand %p379_p0, %p373_p11 }
  0x21   :  { %383 = shalt.err (!%p380_p1)  }
  0x22   :  { %47 = dma.hbm_to_vmem [thread:$0]  %s509_s2, 128, %s45_s25, [#allocation4] }
  0x23   :  { %408 = dma.done.wait [#allocation4], 128 }
  0x24   :  { %409 = vsyncadd [#allocation4], 4294967168  ;;  %304 = vmatprep.subr.mxu0 %v414_v1  ;;  %v51_v2 = vld [vmem:[#allocation3] sm:$0xff]  ;;  %vm53_vm2 = vcmask 261120   ;;  %vm416_vm3 = vmmov 0   ;;  %v70_v14 = vstv %s507_s0  ;;  %vm80_vm4 = vcmask 7168  }
  0x25   :  { %v62_v3 = vld [vmem:[#allocation12] sm:$0xff]  ;;  %v52_v4 = vmul.f32 %v51_v2, %v51_v2  ;;  %306 = vmatprep.mubr.msk.f32.mxu0 %vm416_vm3, %v414_v1  ;;  %81 = vst.msk [vmem:[#allocation7] sm:$0xff] %vm80_vm4, %v413_v0  ;;  %82 = vst.msk [vmem:[#allocation8] sm:$0xff] %vm80_vm4, %v414_v1  ;;  %vm161_vm5 = vcmask 64512   ;;  %v199_v24 = vlaneseq  ;;  %v185_v30 = vld [vmem:[#allocation5] sm:$0x1] }
  0x26   :  { %v63_v5 = vmul.f32 %v62_v3, %v62_v3  ;;  %v417_v35 = vmov 0   ;;  %v193_v47 = vld [vmem:[#allocation6] sm:$0x1]  ;;  %s418_s11 = smov [#allocation15]  }
  0x27   :  { %v54_v6 = vsel %vm53_vm2, %v52_v4, 0.0  ;;  %v200_v27 = vshrl.u32 %v199_v24, 7  ;;  %322 = vset.pattern.permute.xlu1 %v417_v35  ;;  %323 = vset.pattern.permute.xlu0 %v417_v35  ;;  %s284_s12 = sshll.u32 %s418_s11, 4  ;;  %s285_s12 = int_to_ptr.vmem [resolvable:$true] %s284_s12 }
  0x28   :  { %55 = vadd.xlane.f32.xlu0 %v54_v6  ;;  %v65_v7 = vsel %vm53_vm2, %v63_v5, 0.0  ;;  %s384_s13 = scalar_lea.vmem %s285_s12, 16  ;;  %s388_s14 = scalar_lea.vmem %s285_s12, 32 }
  0x29   :  { %v201_v31 = vsub.s32 0, %v200_v27  ;;  %p385_p2 = scmp.ne.s32.totalorder %s285_s12, %s384_s13  ;;  %p389_p3 = scmp.lt.s32.totalorder %s285_s12, %s285_s12 }
  0x2a   :  { %p390_p4 = scmp.lt.s32.totalorder %s388_s14, %s384_s13 }
  0x2c   :  { %66 = vadd.xlane.f32.xlu0 %v65_v7  ;;  %v160_v52 = vld [vmem:[#allocation7] sm:$0xff]  ;;  %v166_v6 = vld [vmem:[#allocation8] sm:$0xff]  ;;  %p391_p5 = por %p390_p4, %p389_p3 }
  0x2e   :  { %p392_p6 = pnand %p391_p5, %p385_p2 }
  0xb5   :  { %v56_v8 = vpop.xlane.xlu0 %55 }
  0xb6   :  { %v57_v9 = vmax.f32 %v56_v8, 1e-24 }
  0xb8   :  { %324 = vrsqrt.f32 %v57_v9 }
  0xb9   :  { %v67_v10 = vpop.xlane.xlu0 %66 }
  0xba   :  { %v68_v11 = vmax.f32 %v67_v10, 1e-24 }
  0xbc   :  { %326 = vrsqrt.f32 %v68_v11 }
  0xc2   :  { %v325_v12 = vpop.eup %324 }
  0xc3   :  { %v59_v13 = vmul.f32 %v325_v12, %v51_v2 }
  0xc5   :  { %60 = vst.msk [vmem:[#allocation2] sm:$0xff] %vm53_vm2, %v59_v13 }
  0xc6   :  { %v327_v15 = vpop.eup %326 }
  0xc7   :  { %v71_v16 = vmul.f32 %v327_v15, %v70_v14 }
  0xc9   :  { %v72_v17 = vmul.f32 %v71_v16, %v62_v3 }
  0xcc   :  { %v83_v18 = vld [vmem:[#allocation2] sm:$0xff] }
  0xcd   :  { %305 = vmatpush3.xpose.msk.msra.mxu0 %vm53_vm2, %v83_v18  ;;  %v475_v19 = vmul.f32 %v83_v18, %v72_v17 }
  0xcf   :  { %v77_v3 = vsel %vm53_vm2, %v475_v19, 0.0 }
  0xd0   :  { %307 = vmatmul.mubr.msk.f32.vlgmr.msra.gmra.mrb[0].mxu0 %vm53_vm2, %v72_v17 }
 0x1a3   :  { %v156_v20 = vpop.f32.mrb[0].mxu0 }
 0x1a4   :  { %v308_v21 = vpop.f32.mrb[1].mxu0  ;;  %v162_v22 = vsel %vm161_vm5, %v156_v20, -inf }
 0x1a5   :  { %163 = vmax.xlane.f32.xlu1 %v162_v22  ;;  %v186_v23 = vrot.slane %v162_v22, 4 }
 0x1a7   :  { %v187_v25 = vmax.f32 %v162_v22, %v186_v23 }
 0x1a9   :  { %v188_v26 = vrot.slane %v187_v25, 2 }
 0x1ab   :  { %v189_v28 = vmax.f32 %v187_v25, %v188_v26 }
 0x1ad   :  { %v190_v29 = vrot.slane %v189_v28, 1 }
 0x1af   :  { %v191_v32 = vmax.f32 %v189_v28, %v190_v29 }
 0x1b1   :  { %v192_v33 = vmax.f32 %v185_v30, %v191_v32 }
 0x1b3   :  { %v202_v34 = vrot.slane %v192_v33, %v201_v31  ;;  %217 = vst.msk [vmem:[#allocation5] sm:$0x1] %vm30_vm0, %v192_v33  ;;  %v194_v38 = vsub.f32 %v185_v30, %v192_v33 }
 0x1b5   :  { %v204_v36 = vsub.f32 %v156_v20, %v202_v34  ;;  %v195_v39 = vmul.f32 1.442695, %v194_v38 }
 0x1b7   :  { %v205_v37 = vmul.f32 1.442695, %v204_v36 }
 0x1b9   :  { %328 = vpow2.f32 %v205_v37 }
 0x1ba   :  { %330 = vpow2.f32 %v195_v39  ;;  %v255_v59 = vld [vmem:[#allocation5] sm:$0x1]  ;;  %v223_v39 = vld [vmem:[#allocation9] sm:$0x1] }
 0x1c3   :  { %v329_v40 = vpop.eup %328 }
 0x1c4   :  { %v207_v41 = vsel %vm161_vm5, %v329_v40, 0.0  ;;  %v331_v46 = vpop.eup %330 }
 0x1c5   :  { %v208_v42 = vrot.slane %v207_v41, 4  ;;  %v197_v49 = vmul.f32 %v331_v46, %v193_v47 }
 0x1c7   :  { %v209_v43 = vadd.f32 %v208_v42, %v207_v41  ;;  %v238_v42 = vld [vmem:[#allocation10] sm:$0x1] }
 0x1c9   :  { %v210_v44 = vrot.slane %v209_v43, 2 }
 0x1cb   :  { %v211_v45 = vadd.f32 %v210_v44, %v209_v43 }
 0x1cd   :  { %v212_v48 = vrot.slane %v211_v45, 1 }
 0x1cf   :  { %v213_v50 = vadd.f32 %v212_v48, %v211_v45 }
 0x1d1   :  { %v214_v51 = vadd.f32 %v213_v50, %v197_v49 }
 0x1d3   :  { %216 = vst.msk [vmem:[#allocation6] sm:$0x1] %vm30_vm0, %v214_v51 }
 0x1da   :  { %v256_v56 = vld [vmem:[#allocation6] sm:$0x1] }
 0x1db   :  { %332 = vlog2.f32 %v256_v56 }
 0x1e5   :  { %v333_v57 = vpop.eup %332 }
 0x1e6   :  { %v258_v58 = vmul.f32 0.6931472, %v333_v57 }
 0x1e8   :  { %v259_v60 = vadd.f32 %v258_v58, %v255_v59 }
 0x1ea   :  { %v261_v61 = vsel %vm30_vm0, %v259_v60, 0.0 }
 0x232   :  { %v164_v53 = vpop.xlane.xlu1 %163 }
 0x233   :  { %v165_v54 = vmax.f32 %v160_v52, %v164_v53 }
 0x235   :  { %v167_v55 = vsub.f32 %v160_v52, %v165_v54  ;;  %184 = vst.msk [vmem:[#allocation7] sm:$0xff] %vm80_vm4, %v165_v54  ;;  %173 = vperm.xlu1 %322, %v165_v54  }
 0x237   :  { %v168_v4 = vmul.f32 1.442695, %v167_v55 }
 0x23c   :  { %v218_v13 = vld [vmem:[#allocation7] sm:$0xff] }
 0x259   :  { %262 = vadd.xlane.f32.xlu1 %v261_v61 }
 0x2b4   :  { %v174_v62 = vpop.permute.xlu1 %173 }
 0x2b5   :  { %v176_v63 = vsub.f32 %v156_v20, %v174_v62 }
 0x2b7   :  { %v177_v0 = vmul.f32 1.442695, %v176_v63 }
 0x2b9   :  { %334 = vpow2.f32 %v177_v0 }
 0x2ba   :  { %336 = vpow2.f32 %v168_v4 }
 0x2c3   :  { %v335_v1 = vpop.eup %334 }
 0x2c4   :  { %v179_v2 = vsel %vm161_vm5, %v335_v1, 0.0  ;;  %v337_v5 = vpop.eup %336 }
 0x2c5   :  { %180 = vadd.xlane.f32.xlu0 %v179_v2  ;;  %v170_v7 = vmul.f32 %v337_v5, %v166_v6 }
 0x2c9   :  { %78 = vadd.xlane.f32.xlu0 %v77_v3 }
 0x2e6   :  { %v263_v18 = vpop.xlane.xlu1 %262 }
 0x2e7   :  { %v264_v19 = vrot.slane %v263_v18, 4 }
 0x2e9   :  { %v265_v20 = vadd.f32 %v264_v19, %v263_v18 }
 0x2eb   :  { %v266_v24 = vrot.slane %v265_v20, 2 }
 0x2ed   :  { %v267_v30 = vadd.f32 %v266_v24, %v265_v20 }
 0x2ef   :  { %v268_v35 = vrot.slane %v267_v30, 1 }
 0x2f1   :  { %v269_v38 = vadd.f32 %v268_v35, %v267_v30 }
 0x352   :  { %v181_v8 = vpop.xlane.xlu0 %180 }
 0x353   :  { %v182_v9 = vadd.f32 %v181_v8, %v170_v7 }
 0x355   :  { %183 = vst.msk [vmem:[#allocation8] sm:$0xff] %vm80_vm4, %v182_v9 }
 0x356   :  { %v79_v16 = vpop.xlane.xlu0 %78 }
 0x357   :  { %v239_v17 = vsel %vm80_vm4, %v79_v16, 0.0 }
 0x35c   :  { %v219_v10 = vld [vmem:[#allocation8] sm:$0xff] }
 0x35d   :  { %338 = vlog2.f32 %v219_v10 }
 0x367   :  { %v339_v11 = vpop.eup %338 }
 0x368   :  { %v221_v12 = vmul.f32 0.6931472, %v339_v11 }
 0x36a   :  { %v222_v14 = vadd.f32 %v221_v12, %v218_v13 }
 0x36c   :  { %v224_v15 = vsel %vm80_vm4, %v222_v14, 0.0 }
 0x36d   :  { %225 = vadd.xlane.f32.xlu0 %v224_v15 }
 0x371   :  { %240 = vadd.xlane.f32.xlu0 %v239_v17 }
 0x3fa   :  { %v226_v21 = vpop.xlane.xlu0 %225 }
 0x3fb   :  { %v227_v22 = vrot.slane %v226_v21, 4 }
 0x3fd   :  { %v228_v23 = vadd.f32 %v227_v22, %v226_v21 }
 0x3fe   :  { %v241_v25 = vpop.xlane.xlu0 %240 }
 0x3ff   :  { %v229_v26 = vrot.slane %v228_v23, 2  ;;  %v242_v27 = vrot.slane %v241_v25, 4 }
 0x401   :  { %v243_v28 = vadd.f32 %v242_v27, %v241_v25  ;;  %v230_v29 = vadd.f32 %v229_v26, %v228_v23 }
 0x403   :  { %v244_v31 = vrot.slane %v243_v28, 2  ;;  %v231_v32 = vrot.slane %v230_v29, 1 }
 0x405   :  { %v245_v33 = vadd.f32 %v244_v31, %v243_v28  ;;  %v232_v34 = vadd.f32 %v231_v32, %v230_v29 }
 0x407   :  { %309 = vpush %v232_v34  ;;  %v246_v36 = vrot.slane %v245_v33, 1 }
 0x409   :  { %v247_v37 = vadd.f32 %v246_v36, %v245_v33 }
 0x40b   :  { %311 = vpush %v247_v37 }
 0x40c   :  { %313 = vpush %v269_v38 }
 0x438   :  { %s310_s0 = spop %309 }
 0x439   :  { %v234_v40 = vstv %s310_s0 }
 0x43a   :  { %v235_v41 = vadd.f32 %v234_v40, %v223_v39 }
 0x43c   :  { %237 = vst.msk [vmem:[#allocation9] sm:$0x1] %vm33_vm1, %v235_v41  ;;  %s312_s9 = spop %311 }
 0x43d   :  { %v249_v43 = vstv %s312_s9  ;;  %s314_s10 = spop %313 }
 0x43e   :  { %v250_v44 = vadd.f32 %v249_v43, %v238_v42  ;;  %v271_v46 = vstv %s314_s10 }
 0x440   :  { %251 = vst.msk [vmem:[#allocation10] sm:$0x1] %vm33_vm1, %v250_v44 }
 0x443   :  { %v260_v45 = vld [vmem:[#allocation9] sm:$0x1] }
 0x444   :  { %v272_v48 = vadd.f32 %v271_v46, %v260_v45 }
 0x447   :  { %v273_v47 = vld [vmem:[#allocation10] sm:$0x1] }
 0x448   :  { %v274_v49 = vmul.f32 2.0, %v273_v47 }
 0x44a   :  { %v275_v50 = vsub.f32 %v272_v48, %v274_v49 }
 0x44c   :  { %v276_v51 = vmul.f32 0.0625, %v275_v50 }
 0x44e   :  { %277 = vst.msk [vmem:[#allocation15] sm:$0x1] %vm33_vm1, %v276_v51 }
 0x44f   :  { %395 = shalt.err (!%p392_p6)
}
 0x450   :  { %s396_s17 = scalar_lea.hbm %s510_s3, 16 }
 0x451   :  { %p397_p7 = scmp.ne.s32.totalorder %s510_s3, %s396_s17  ;;  %p400_p8 = scmp.lt.u32.totalorder %s396_s17, %s510_s3 }
 0x453   :  { %p402_p9 = pnand %p400_p8, %p397_p7 }
 0x455   :  { %405 = shalt.err (!%p402_p9)
}
 0x456   :  { %287 = dma.vmem_to_hbm [thread:$0]  %s285_s12, 16, %s510_s3, [#allocation14]  }
 0x457   :  { %410 = dma.done.wait [#allocation14], 16  }
 0x458   :  { %411 = vsyncadd [#allocation14], 4294967280 }
 0x459   :  { %291 = vsyncpa [#allocation13], 1 }
 0x45a   :  { %292 = vsyncpa [#allocation14], 1 }
 0x45b   :  { %293 = vsyncmov [#allocation4] }
 0x45e   :  { %s294_s24 = vpop.sfrf %293 }
 0x45f   :  { %p301_p10 = scmp.ne.s32.totalorder %s294_s24, 0 }
 0x461   :  { %298 = shalt.err (%p301_p10)  }

</bundles_post_ra>
